<compile_context>
chip_gen: v6e
topology: v6e:2x2x1
jax: 0.10.0
libtpu: 0.0.40
codegen_flags: <defaults>
</compile_context>

<pallas_src>
import functools

import jax
import jax.numpy as jnp
from jax import lax
from jax.experimental import pallas as pl
from jax.experimental.pallas import tpu as pltpu


def _ml_loss_kernel(pred_ref, tgt_ref, out_ref, picked_ref, *, tile_c):
    """Grid axes: (parallel batch-tile / L-half, L tiles, C tiles)."""
    l = pl.program_id(1)
    c = pl.program_id(2)

    @pl.when((l == 0) & (c == 0))
    def _init_out():
        out_ref[...] = jnp.zeros_like(out_ref)

    @pl.when(c == 0)
    def _reset_picked():
        picked_ref[...] = jnp.zeros_like(picked_ref)

    pred = pred_ref[...]                       # (tl, tn, tc), native dtype
    tgt = tgt_ref[...]                         # (tl, tn), int32

    # One-hot select of pred[l, n, tgt[l, n]] restricted to this C tile.  All
    # non-matching lanes contribute an exact scalar zero (no (tl,tn,tc) zeros
    # broadcast), so garbage in partially out-of-bounds blocks never leaks in.
    tgt_local = tgt - c * tile_c
    class_iota = lax.broadcasted_iota(jnp.int32, pred.shape, dimension=2)
    onehot = class_iota == tgt_local[:, :, None]
    sel = jnp.where(onehot, pred, jnp.zeros((), pred.dtype))
    # TODO(synk): for C <~ 256 this cross-lane sum may saturate the XLU before
    # the DMA; offloading it to the idle MXU (dot with a ones vector) is a
    # follow-up to validate with a bundle dump before committing.
    picked_ref[...] += jnp.sum(sel, axis=-1).astype(jnp.float32)

    @pl.when(c == pl.num_programs(2) - 1)
    def _accumulate():
        # log/mask only on the tiny (tl, tn) gathered result (EUP work / C).
        nll = -jnp.log(picked_ref[...] + jnp.float32(1e-4))        # (tl, tn)
        masked = jnp.where(tgt > 0, nll, jnp.float32(0.0))         # pad rows -> 0
        out_ref[...] += jnp.sum(masked, axis=0, keepdims=True)[None]   # (1,1,tn)


def _vmem_capacity_bytes():
    try:
        return int(pltpu.get_tpu_info().vmem_capacity_bytes)
    except Exception:
        return 64 * 1024 * 1024    # conservative default: v7x per-TensorCore VMEM


def ml_loss(predictions, targets, target_lengths, reduction="mean",
            pred_step_bytes=4 * 1024 * 1024, vmem_budget_bytes=None):
    """predictions: (L, N, C) probabilities; targets: (L, N) int (0 = padding);
    target_lengths: (N,). Returns scalar ('mean'/'sum') or (N,) ('none')."""
    if reduction not in ("mean", "sum", "none"):
        raise ValueError(f"{reduction} is not a valid value for reduction")

    L, N, C = predictions.shape
    pred_isz = jnp.dtype(predictions.dtype).itemsize
    tgt = targets.astype(jnp.int32)

    capacity = _vmem_capacity_bytes()
    budget = int(capacity * 0.7) if vmem_budget_bytes is None else int(vmem_budget_bytes)

    # ---- batch tiling (part of the leading 'parallel' grid axis) ----
    if N <= 128:
        tn, grid_b = N, 1
    else:
        tn, grid_b = 128, pl.cdiv(N, 128)
    Np = tn * grid_b

    # ---- VMEM accounting: pred + targets double-buffered, picked scratch ----
    per_row_live = 2 * tn * C * pred_isz + 2 * tn * 4 + tn * 4     # per L row
    fixed_live = 64 * 1024                                          # out blocks + slack
    min_tl = L if L < 8 else 8

    if min_tl * per_row_live + fixed_live <= budget:
        # Full-C blocks; size tl for multi-MiB DMA steps within the budget.
        tc, grid_c = C, 1
        row_bytes = tn * C * pred_isz
        tl_budget = (budget - fixed_live) // per_row_live
        tl_target = max(1, pred_step_bytes // max(1, row_bytes))
        tl = min(tl_budget, tl_target)
        if tl >= L:
            tl = L
        else:
            tl = max(8, (tl // 8) * 8)
    else:
        # Vocab-scale C: tile the class (lane) axis instead of shrinking DMAs.
        tl = min_tl
        avail = budget - fixed_live - tl * (2 * tn * 4 + tn * 4)
        tc = max(128, (avail // max(1, 2 * tl * tn * pred_isz)) // 128 * 128)
        tc = min(tc, C)
        grid_c = pl.cdiv(C, tc)

    # ---- 2-way split of L so v7x's 2nd TensorCore gets work when grid_b == 1 ----
    grid_p = 1
    if grid_b == 1:
        if tl >= L:
            if L >= 16:
                tl = max(8, (((L + 1) // 2) + 7) // 8 * 8)
                grid_p = 2
        elif pl.cdiv(L, tl) % 2 == 0:
            grid_p = 2
        else:
            for cand in (tl - 8, tl - 16, tl - 24):
                if cand >= 8 and pl.cdiv(L, cand) % 2 == 0:
                    tl, grid_p = cand, 2
                    break

    n_l_blocks = pl.cdiv(L, tl)
    grid_l = n_l_blocks // grid_p
    l_cover = grid_p * grid_l * tl

    # Only the small int32 targets are padded; predictions stream unpadded and
    # their partially out-of-bounds blocks are neutralized by select + mask.
    if l_cover != L or Np != N:
        tgt = jnp.pad(tgt, ((0, l_cover - L), (0, Np - N)))

    if grid_p == 2:                      # only used when grid_b == 1
        to_p, to_b = (lambda g: g), (lambda g: 0)
    else:
        to_p, to_b = (lambda g: 0), (lambda g: g)

    grid = (grid_p * grid_b, grid_l, grid_c)

    live = 2 * tl * tn * tc * pred_isz + 2 * tl * tn * 4 + tl * tn * 4 + fixed_live
    vmem_limit = int(min(capacity * 0.92, max(budget, live) + (8 << 20)))

    cost = pl.CostEstimate(
        flops=int(3 * L * N * C + 8 * L * N),
        transcendentals=int(L * N),
        bytes_accessed=int(L * N * C * pred_isz + L * N * 4 + grid_p * Np * 4),
    )

    kernel = functools.partial(_ml_loss_kernel, tile_c=tc)

    partials = pl.pallas_call(
        kernel,
        out_shape=jax.ShapeDtypeStruct((grid_p, 1, Np), jnp.float32),
        grid_spec=pltpu.PrefetchScalarGridSpec(
            num_scalar_prefetch=0,
            grid=grid,
            in_specs=[
                pl.BlockSpec((tl, tn, tc),
                             lambda g, l, c: (to_p(g) * grid_l + l, to_b(g), c)),
                pl.BlockSpec((tl, tn),
                             lambda g, l, c: (to_p(g) * grid_l + l, to_b(g))),
            ],
            out_specs=pl.BlockSpec((1, 1, tn),
                                   lambda g, l, c: (to_p(g), 0, to_b(g))),
            scratch_shapes=[pltpu.VMEM((tl, tn), jnp.float32)],
        ),
        compiler_params=pltpu.CompilerParams(
            dimension_semantics=("parallel", "arbitrary", "arbitrary"),
            vmem_limit_bytes=vmem_limit,
        ),
        cost_estimate=cost,
    )(predictions, tgt)

    per_seq = jnp.sum(partials[:, 0, :N], axis=0) / target_lengths.astype(jnp.float32)
    if reduction == "mean":
        return jnp.mean(per_seq)
    if reduction == "sum":
        return jnp.sum(per_seq)
    return per_seq


# ---------------------------- reference & demo ---------------------------- #

def _reference(predictions, targets, target_lengths, reduction="mean"):
    logp = jnp.log(predictions.astype(jnp.float32) + 1e-4)
    picked = jnp.take_along_axis(logp, targets[:, :, None].astype(jnp.int32),
                                 axis=-1)[..., 0]
    mask = jnp.clip(targets, 0, 1).astype(jnp.float32)
    per_seq = jnp.sum(-picked * mask, axis=0) / target_lengths.astype(jnp.float32)
    if reduction == "mean":
        return jnp.mean(per_seq)
    if reduction == "sum":
        return jnp.sum(per_seq)
    return per_seq


def _make_inputs(key, L, N, C):
    k1, k2, k3 = jax.random.split(key, 3)
    logits = jax.random.normal(k1, (L, N, C), dtype=jnp.float32)
    predictions = jax.nn.softmax(logits, axis=-1)       # module consumes probabilities
    target_lengths = jax.random.randint(k3, (N,), max(1, L // 2), L + 1)
    raw_tgt = jax.random.randint(k2, (L, N), 1, C)      # non-pad classes in [1, C)
    pos = jnp.arange(L)[:, None]
    targets = jnp.where(pos < target_lengths[None, :], raw_tgt, 0)   # pad index 0
    return predictions, targets, target_lengths.astype(jnp.int32)


if __name__ == "__main__":
    # Small case (toy-scale shapes implied by the module's forward).
    preds, tgts, lens = _make_inputs(jax.random.PRNGKey(0), L=8, N=2, C=32)
    out = jax.block_until_ready(ml_loss(preds, tgts, lens))
    ref = _reference(preds, tgts, lens)
    assert jnp.allclose(out, ref, rtol=1e-4, atol=1e-4), (out, ref)

    out_none = jax.block_until_ready(ml_loss(preds, tgts, lens, reduction="none"))
    ref_none = _reference(preds, tgts, lens, reduction="none")
    assert jnp.allclose(out_none, ref_none, rtol=1e-4, atol=1e-4), (out_none, ref_none)

    # Medium case: exercises the 2-way parallel L split, target padding and
    # partially out-of-bounds prediction blocks.
    preds2, tgts2, lens2 = _make_inputs(jax.random.PRNGKey(1), L=300, N=4, C=160)
    out2 = jax.block_until_ready(ml_loss(preds2, tgts2, lens2))
    ref2 = _reference(preds2, tgts2, lens2)
    assert jnp.allclose(out2, ref2, rtol=1e-4, atol=1e-4), (out2, ref2)

    # Force the class-axis (lane) tiling path with a tiny artificial VMEM budget.
    preds3, tgts3, lens3 = _make_inputs(jax.random.PRNGKey(2), L=64, N=8, C=640)
    out3 = jax.block_until_ready(
        ml_loss(preds3, tgts3, lens3, vmem_budget_bytes=300_000))
    ref3 = _reference(preds3, tgts3, lens3)
    assert jnp.allclose(out3, ref3, rtol=1e-4, atol=1e-4), (out3, ref3)

    print("KERNEL_OK")
</pallas_src>

<mosaic_0001>
module attributes {stable_mosaic.version = 11 : i64} {
  func.func @_ml_loss_kernel(%arg0: i32, %arg1: i32, %arg2: i32, %arg3: memref<8x2x32xf32, #tpu.memory_space<vmem>>, %arg4: memref<8x2xi32, #tpu.memory_space<vmem>>, %arg5: memref<1x1x2xf32, #tpu.memory_space<vmem>>, %arg6: memref<8x2xf32, #tpu.memory_space<vmem>>) attributes {dimension_semantics = [#tpu.dimension_semantics<parallel>, #tpu.dimension_semantics<arbitrary>, #tpu.dimension_semantics<arbitrary>], iteration_bounds = array<i64: 1, 1, 1>, scalar_prefetch = 0 : i64, scratch_operands = 1 : i64, tpu.core_type = #tpu.core_type<tc>, window_params = [{transform_indices = @transform_0, window_bounds = array<i64: 8, 2, 32>}, {transform_indices = @transform_1, window_bounds = array<i64: 8, 2>}, {transform_indices = @transform_2, window_bounds = array<i64: 1, 1, 2>}]} {
    %c0_i32 = arith.constant 0 : i32
    %0 = arith.cmpi eq, %arg1, %c0_i32 : i32
    %c0_i32_0 = arith.constant 0 : i32
    %1 = arith.cmpi eq, %arg2, %c0_i32_0 : i32
    %2 = arith.andi %0, %1 : i1
    %3 = arith.extui %2 : i1 to i32
    %c0_i32_1 = arith.constant 0 : i32
    %4 = arith.cmpi ne, %3, %c0_i32_1 : i32
    scf.if %4 {
      %cst_15 = arith.constant 0.000000e+00 : f32
      %26 = vector.broadcast %cst_15 : f32 to vector<1x1x2xf32>
      %c0_16 = arith.constant 0 : index
      %c0_17 = arith.constant 0 : index
      %c0_18 = arith.constant 0 : index
      %27 = vector.load %arg5[%c0_16, %c0_17, %c0_18] : memref<1x1x2xf32, #tpu.memory_space<vmem>>, vector<1x1x2xf32>
      tpu.vector_store %arg5[%c0_16, %c0_17, %c0_18], %26 {strides = array<i32>} : memref<1x1x2xf32, #tpu.memory_space<vmem>>, vector<1x1x2xf32>,
    } else {
    }
    %c0_i32_2 = arith.constant 0 : i32
    %5 = arith.cmpi eq, %arg2, %c0_i32_2 : i32
    %6 = arith.extui %5 : i1 to i32
    %c0_i32_3 = arith.constant 0 : i32
    %7 = arith.cmpi ne, %6, %c0_i32_3 : i32
    scf.if %7 {
      %cst_15 = arith.constant 0.000000e+00 : f32
      %26 = vector.broadcast %cst_15 : f32 to vector<8x2xf32>
      %c0_16 = arith.constant 0 : index
      %c0_17 = arith.constant 0 : index
      %27 = vector.load %arg6[%c0_16, %c0_17] : memref<8x2xf32, #tpu.memory_space<vmem>>, vector<8x2xf32>
      tpu.vector_store %arg6[%c0_16, %c0_17], %26 {strides = array<i32>} : memref<8x2xf32, #tpu.memory_space<vmem>>, vector<8x2xf32>,
    } else {
    }
    %c0 = arith.constant 0 : index
    %c0_4 = arith.constant 0 : index
    %c0_5 = arith.constant 0 : index
    %8 = vector.load %arg3[%c0, %c0_4, %c0_5] : memref<8x2x32xf32, #tpu.memory_space<vmem>>, vector<8x2x32xf32>
    %c0_6 = arith.constant 0 : index
    %c0_7 = arith.constant 0 : index
    %9 = vector.load %arg4[%c0_6, %c0_7] : memref<8x2xi32, #tpu.memory_space<vmem>>, vector<8x2xi32>
    %c32_i32 = arith.constant 32 : i32
    %10 = arith.muli %arg2, %c32_i32 : i32
    %11 = vector.broadcast %10 : i32 to vector<8x2xi32>
    %12 = arith.subi %9, %11 : vector<8x2xi32>
    %13 = tpu.iota {dimensions = array<i32: 2>} : vector<8x2x32xi32>
    %14 = vector.shape_cast %12 : vector<8x2xi32> to vector<8x2x1xi32>
    %15 = vector.broadcast %14 : vector<8x2x1xi32> to vector<8x2x32xi32>
    %16 = arith.cmpi eq, %13, %15 : vector<8x2x32xi32>
    %cst = arith.constant 0.000000e+00 : f32
    %17 = vector.broadcast %cst : f32 to vector<8x2x32xf32>
    %18 = arith.select %16, %8, %17 : vector<8x2x32xi1>, vector<8x2x32xf32>
    %c0_8 = arith.constant 0 : index
    %c0_9 = arith.constant 0 : index
    %19 = vector.load %arg6[%c0_8, %c0_9] : memref<8x2xf32, #tpu.memory_space<vmem>>, vector<8x2xf32>
    %cst_10 = arith.constant dense<0.000000e+00> : vector<8x2xf32>
    %20 = vector.multi_reduction <add>, %18, %cst_10 [2] : vector<8x2x32xf32> to vector<8x2xf32>
    %21 = arith.addf %19, %20 : vector<8x2xf32>
    %c0_11 = arith.constant 0 : index
    %c0_12 = arith.constant 0 : index
    %22 = vector.load %arg6[%c0_11, %c0_12] : memref<8x2xf32, #tpu.memory_space<vmem>>, vector<8x2xf32>
    tpu.vector_store %arg6[%c0_11, %c0_12], %21 {strides = array<i32>} : memref<8x2xf32, #tpu.memory_space<vmem>>, vector<8x2xf32>,
    %c0_i32_13 = arith.constant 0 : i32
    %23 = arith.cmpi eq, %arg2, %c0_i32_13 : i32
    %24 = arith.extui %23 : i1 to i32
    %c0_i32_14 = arith.constant 0 : i32
    %25 = arith.cmpi ne, %24, %c0_i32_14 : i32
    scf.if %25 {
      %c0_15 = arith.constant 0 : index
      %c0_16 = arith.constant 0 : index
      %26 = vector.load %arg6[%c0_15, %c0_16] : memref<8x2xf32, #tpu.memory_space<vmem>>, vector<8x2xf32>
      %cst_17 = arith.constant 9.99999974E-5 : f32
      %27 = vector.broadcast %cst_17 : f32 to vector<8x2xf32>
      %28 = arith.addf %26, %27 : vector<8x2xf32>
      %29 = math.log %28 : vector<8x2xf32>
      %cst_18 = arith.constant 0.000000e+00 : f32
      %30 = vector.broadcast %cst_18 : f32 to vector<8x2xf32>
      %31 = arith.subf %30, %29 : vector<8x2xf32>
      %c0_i32_19 = arith.constant 0 : i32
      %32 = vector.broadcast %c0_i32_19 : i32 to vector<8x2xi32>
      %33 = arith.cmpi sgt, %9, %32 : vector<8x2xi32>
      %cst_20 = arith.constant 0.000000e+00 : f32
      %34 = vector.broadcast %cst_20 : f32 to vector<8x2xf32>
      %35 = arith.select %33, %31, %34 : vector<8x2xi1>, vector<8x2xf32>
      %c0_21 = arith.constant 0 : index
      %c0_22 = arith.constant 0 : index
      %c0_23 = arith.constant 0 : index
      %36 = vector.load %arg5[%c0_21, %c0_22, %c0_23] : memref<1x1x2xf32, #tpu.memory_space<vmem>>, vector<1x1x2xf32>
      %cst_24 = arith.constant dense<0.000000e+00> : vector<2xf32>
      %37 = vector.multi_reduction <add>, %35, %cst_24 [0] : vector<8x2xf32> to vector<2xf32>
      %38 = vector.shape_cast %37 : vector<2xf32> to vector<1x2xf32>
      %39 = vector.shape_cast %38 : vector<1x2xf32> to vector<1x1x2xf32>
      %40 = arith.addf %36, %39 : vector<1x1x2xf32>
      %c0_25 = arith.constant 0 : index
      %c0_26 = arith.constant 0 : index
      %c0_27 = arith.constant 0 : index
      %41 = vector.load %arg5[%c0_25, %c0_26, %c0_27] : memref<1x1x2xf32, #tpu.memory_space<vmem>>, vector<1x1x2xf32>
      tpu.vector_store %arg5[%c0_25, %c0_26, %c0_27], %40 {strides = array<i32>} : memref<1x1x2xf32, #tpu.memory_space<vmem>>, vector<1x1x2xf32>,
    } else {
    }
    return
  }
  func.func @transform_0(%arg0: i32, %arg1: i32, %arg2: i32) -> (i32, i32, i32) {
    %c0_i32 = arith.constant 0 : i32
    %0 = arith.addi %c0_i32, %arg1 : i32
    %c0_i32_0 = arith.constant 0 : i32
    return %0, %arg0, %arg2 : i32, i32, i32
  }
  func.func @transform_1(%arg0: i32, %arg1: i32, %arg2: i32) -> (i32, i32) {
    %c0_i32 = arith.constant 0 : i32
    %0 = arith.addi %c0_i32, %arg1 : i32
    %c0_i32_0 = arith.constant 0 : i32
    return %0, %arg0 : i32, i32
  }
  func.func @transform_2(%arg0: i32, %arg1: i32, %arg2: i32) -> (i32, i32, i32) {
    %c0_i32 = arith.constant 0 : i32
    %c0_i32_0 = arith.constant 0 : i32
    %c0_i32_1 = arith.constant 0 : i32
    return %c0_i32, %c0_i32_0, %arg0 : i32, i32, i32
  }
}

</mosaic_0001>

<bundles_post_ra>
// kernel: tpu_custom_call.1
= control target key start
LH: loop header
LB: loop body
LE: loop exit
PB: predicated region body
PF: predicated region fallthrough
CT: control target
= control target key end

     0   :  { %7 = vsyncpa [#allocation4], 0  ;;  %s360_s0 = inlined_call_operand.hbm [shape: f32[8,2,32], index: 0, kind: input, shape index: {}]   ;;  %s361_s1 = inlined_call_operand.vmem [shape: s32[8,2], index: 1, kind: input, shape index: {}]   ;;  %s362_s2 = inlined_call_operand.hbm [shape: f32[1,1,2], index: 2, kind: output, shape index: {}]  }
   0x1   :  { %8 = vsyncpa [#allocation5], 0  ;;  %s296_s9 = smov [#allocation3]  }
   0x2   :  { %s14_s10 = sshll.u32 %s296_s9, 4  ;;  %s15_s10 = int_to_ptr.vmem [resolvable:$true] %s14_s10 }
   0x3   :  { %s260_s11 = scalar_lea.vmem %s15_s10, 256  ;;  %p265_p1 = scmp.lt.s32.totalorder %s15_s10, %s15_s10 }
   0x4   :  { %p261_p0 = scmp.ne.s32.totalorder %s15_s10, %s260_s11  ;;  %p266_p2 = scmp.lt.s32.totalorder %s260_s11, %s260_s11 }
   0x6   :  { %p267_p3 = por %p266_p2, %p265_p1 }
   0x8   :  { %p268_p4 = pnand %p267_p3, %p261_p0 }
   0xa   :  { %271 = shalt.err (!%p268_p4)
}
   0xb   :  { %s297_s12 = smov 32   ;;  %s298_s13 = smov 2  }
   0xc   :  { %20 = dma.hbm_to_vmem [thread:$0]  %s360_s0, 256, %s15_s10, [#allocation4], %s297_s12, %s297_s12, %s298_s13  }
   0xd   :  { %292 = dma.done.wait [#allocation4], 256  }
   0xe   :  { %293 = vsyncadd [#allocation4], 4294967040  ;;  %v51_v0 = vlaneseq  ;;  %v328_v6 = vld [vmem:[%s361_s1] sm:$0xff]  ;;  %v39_v20 = vld [vmem:[#allocation3] sm:$0x3]  ;;  %vm126_vm0 = vcmask 254976  }
   0xf   :  { %v41_v21 = vld [vmem:[#allocation3 + $0x4] sm:$0x3]  ;;  %v40_v27 = vld [vmem:[#allocation3 + $0x2] sm:$0x3]  ;;  %v42_v28 = vld [vmem:[#allocation3 + $0x6] sm:$0x3] }
  0x10   :  { %v319_v1 = vshrl.u32 %v51_v0, 7  ;;  %v52_v19 = vand.u32 127, %v51_v0  ;;  %v43_v35 = vld [vmem:[#allocation3 + $0x8] sm:$0x3]  ;;  %v44_v36 = vld [vmem:[#allocation3 + $0xa] sm:$0x3] }
  0x11   :  { %v45_v43 = vld [vmem:[#allocation3 + $0xc] sm:$0x3]  ;;  %v46_v44 = vld [vmem:[#allocation3 + $0xe] sm:$0x3]  ;;  %vm37_vm9 = vcmask 15360   ;;  %v299_v52 = vmov 0.0  }
  0x12   :  { %v55_v2 = vsub.s32 0, %v319_v1  ;;  %v69_v3 = vsub.s32 2, %v319_v1  ;;  %v62_v4 = vsub.s32 1, %v319_v1  ;;  %v76_v5 = vsub.s32 3, %v319_v1  ;;  %38 = vst.msk [vmem:[#allocation2] sm:$0xff] %vm37_vm9, %v299_v52  ;;  %s300_s0 = smov [#allocation6]  }
  0x13   :  { %v83_v11 = vsub.s32 4, %v319_v1  ;;  %v90_v12 = vsub.s32 5, %v319_v1  ;;  %v97_v15 = vsub.s32 6, %v319_v1  ;;  %v104_v16 = vsub.s32 7, %v319_v1  ;;  %s236_s1 = sshll.u32 %s300_s0, 4  ;;  %s237_s1 = int_to_ptr.vmem [resolvable:$true] %s236_s1 }
  0x14   :  { %v56_v7 = vrot.slane %v328_v6, %v55_v2  ;;  %v70_v8 = vrot.slane %v328_v6, %v69_v3  ;;  %v63_v9 = vrot.slane %v328_v6, %v62_v4  ;;  %v77_v10 = vrot.slane %v328_v6, %v76_v5  ;;  %s272_s18 = scalar_lea.vmem %s237_s1, 16  ;;  %s276_s19 = scalar_lea.vmem %s237_s1, 32 }
  0x15   :  { %v84_v13 = vrot.slane %v328_v6, %v83_v11  ;;  %v91_v14 = vrot.slane %v328_v6, %v90_v12  ;;  %v98_v17 = vrot.slane %v328_v6, %v97_v15  ;;  %v105_v18 = vrot.slane %v328_v6, %v104_v16  ;;  %p273_p5 = scmp.ne.s32.totalorder %s237_s1, %s272_s18  ;;  %p277_p6 = scmp.lt.s32.totalorder %s237_s1, %s237_s1 }
  0x16   :  { %58 = vbcast.lane.b32.xlu0 %v56_v7, 256  ;;  %72 = vbcast.lane.b32.xlu1 %v70_v8, 256  ;;  %vm32_vm10 = vcmask 8192   ;;  %v161_v54 = vsub.s32 %v52_v19, %v319_v1  ;;  %vm191_vm11 = vcmask 1041409   ;;  %vm193_vm12 = vcmask 1042434   ;;  %p278_p7 = scmp.lt.s32.totalorder %s276_s19, %s272_s18 }
  0x17   :  { %33 = vst.msk [vmem:[#allocation6] sm:$0x1] %vm32_vm10, %v299_v52  ;;  %vm195_vm13 = vcmask 1043459   ;;  %vm197_vm14 = vcmask 1044484   ;;  %vm199_vm15 = vcmask 1045509  }
  0x18   :  { %p279_p8 = por %p278_p7, %p277_p6 }
  0x19   :  { %v125_v11 = vld [vmem:[#allocation2] sm:$0xff] }
  0x1a   :  { %65 = vbcast.lane.b32.xlu0 %v63_v9, 256  ;;  %79 = vbcast.lane.b32.xlu1 %v77_v10, 256  ;;  %p280_p9 = pnand %p279_p8, %p273_p5 }
  0x1e   :  { %86 = vbcast.lane.b32.xlu0 %v84_v13, 256  ;;  %93 = vbcast.lane.b32.xlu1 %v91_v14, 256 }
  0x22   :  { %100 = vbcast.lane.b32.xlu0 %v98_v17, 256  ;;  %107 = vbcast.lane.b32.xlu1 %v105_v18, 256 }
  0x88   :  { %v59_v22 = vpop.permute.xlu0 %58  ;;  %v73_v23 = vpop.permute.xlu1 %72 }
  0x89   :  { %vm109_vm1 = vcmp.eq.s32.totalorder %v52_v19, %v59_v22  ;;  %vm111_vm2 = vcmp.eq.s32.totalorder %v52_v19, %v73_v23 }
  0x8a   :  { %v117_v24 = vsel %vm109_vm1, %v39_v20, 0.0  ;;  %v119_v25 = vsel %vm111_vm2, %v41_v21, 0.0  ;;  %vm203_vm1 = vcmask 1047559   ;;  %vm217_vm2 = vcmp.gt.s32.totalorder %v328_v6, 0 }
  0x8b   :  { %v127_v26 = vsel %vm126_vm0, %v117_v24, 0.0  ;;  %v133_v31 = vsel %vm126_vm0, %v119_v25, 0.0 }
  0x8c   :  { %v66_v29 = vpop.permute.xlu0 %65  ;;  %128 = vadd.xlane.f32.xlu0 %v127_v26  ;;  %v80_v30 = vpop.permute.xlu1 %79 }
  0x8d   :  { %vm110_vm3 = vcmp.eq.s32.totalorder %v52_v19, %v66_v29  ;;  %vm112_vm4 = vcmp.eq.s32.totalorder %v52_v19, %v80_v30 }
  0x8e   :  { %v118_v32 = vsel %vm110_vm3, %v40_v27, 0.0  ;;  %v120_v33 = vsel %vm112_vm4, %v42_v28, 0.0  ;;  %v219_v28 = vld [vmem:[#allocation6] sm:$0x1] }
  0x8f   :  { %v130_v34 = vsel %vm126_vm0, %v118_v32, 0.0  ;;  %v136_v39 = vsel %vm126_vm0, %v120_v33, 0.0 }
  0x90   :  { %131 = vadd.xlane.f32.xlu1 %v130_v34  ;;  %134 = vadd.xlane.f32.xlu0 %v133_v31  ;;  %v87_v37 = vpop.permute.xlu0 %86  ;;  %v94_v38 = vpop.permute.xlu1 %93 }
  0x91   :  { %vm113_vm5 = vcmp.eq.s32.totalorder %v52_v19, %v87_v37  ;;  %vm114_vm6 = vcmp.eq.s32.totalorder %v52_v19, %v94_v38 }
  0x92   :  { %v121_v40 = vsel %vm113_vm5, %v43_v35, 0.0  ;;  %v122_v41 = vsel %vm114_vm6, %v44_v36, 0.0 }
  0x93   :  { %v139_v42 = vsel %vm126_vm0, %v121_v40, 0.0  ;;  %v142_v47 = vsel %vm126_vm0, %v122_v41, 0.0 }
  0x94   :  { %137 = vadd.xlane.f32.xlu0 %v136_v39  ;;  %v101_v45 = vpop.permute.xlu0 %100  ;;  %140 = vadd.xlane.f32.xlu1 %v139_v42  ;;  %v108_v46 = vpop.permute.xlu1 %107 }
  0x95   :  { %vm115_vm7 = vcmp.eq.s32.totalorder %v52_v19, %v101_v45  ;;  %vm116_vm8 = vcmp.eq.s32.totalorder %v52_v19, %v108_v46 }
  0x96   :  { %v123_v48 = vsel %vm115_vm7, %v45_v43, 0.0  ;;  %v124_v49 = vsel %vm116_vm8, %v46_v44, 0.0 }
  0x97   :  { %v145_v50 = vsel %vm126_vm0, %v123_v48, 0.0  ;;  %v148_v51 = vsel %vm126_vm0, %v124_v49, 0.0  ;;  %vm201_vm0 = vcmask 1046534  }
  0x98   :  { %143 = vadd.xlane.f32.xlu0 %v142_v47  ;;  %146 = vadd.xlane.f32.xlu1 %v145_v50 }
  0x9c   :  { %149 = vadd.xlane.f32.xlu0 %v148_v51 }
 0x115   :  { %v129_v53 = vpop.xlane.xlu0 %128 }
 0x116   :  { %v162_v57 = vrot.slane %v129_v53, %v161_v54 }
 0x119   :  { %v132_v55 = vpop.xlane.xlu1 %131  ;;  %v135_v56 = vpop.xlane.xlu0 %134 }
 0x11a   :  { %v166_v58 = vrot.slane %v132_v55, %v161_v54  ;;  %v170_v59 = vrot.slane %v135_v56, %v161_v54 }
 0x11c   :  { %v192_v60 = vsel %vm191_vm11, %v166_v58, %v162_v57 }
 0x11d   :  { %v138_v61 = vpop.xlane.xlu0 %137  ;;  %v141_v62 = vpop.xlane.xlu1 %140  ;;  %v194_v0 = vsel %vm193_vm12, %v170_v59, %v192_v60 }
 0x11e   :  { %v174_v63 = vrot.slane %v138_v61, %v161_v54  ;;  %v178_v2 = vrot.slane %v141_v62, %v161_v54 }
 0x120   :  { %v196_v3 = vsel %vm195_vm13, %v174_v63, %v194_v0 }
 0x121   :  { %v144_v4 = vpop.xlane.xlu0 %143  ;;  %v147_v5 = vpop.xlane.xlu1 %146  ;;  %v198_v7 = vsel %vm197_vm14, %v178_v2, %v196_v3 }
 0x122   :  { %v182_v1 = vrot.slane %v144_v4, %v161_v54  ;;  %v186_v8 = vrot.slane %v147_v5, %v161_v54 }
 0x124   :  { %v200_v9 = vsel %vm199_vm15, %v182_v1, %v198_v7 }
 0x125   :  { %v150_v10 = vpop.xlane.xlu0 %149  ;;  %v202_v13 = vsel %vm201_vm0, %v186_v8, %v200_v9 }
 0x126   :  { %v190_v12 = vrot.slane %v150_v10, %v161_v54 }
 0x128   :  { %v204_v14 = vsel %vm203_vm1, %v190_v12, %v202_v13 }
 0x129   :  { %v206_v15 = vadd.f32 %v204_v14, %v125_v11 }
 0x12b   :  { %208 = vst.msk [vmem:[#allocation2] sm:$0xff] %vm37_vm9, %v206_v15 }
 0x132   :  { %v212_v16 = vld [vmem:[#allocation2] sm:$0xff] }
 0x133   :  { %v213_v17 = vadd.f32 0.0001, %v212_v16 }
 0x135   :  { %250 = vlog2.f32 %v213_v17 }
 0x142   :  { %v251_v18 = vpop.eup %250 }
 0x143   :  { %v215_v19 = vmul.f32 0.6931472, %v251_v18 }
 0x145   :  { %v216_v20 = vsub.f32 0.0, %v215_v19 }
 0x147   :  { %v218_v21 = vsel %vm217_vm2, %v216_v20, 0.0 }
 0x148   :  { %v220_v22 = vsel %vm37_vm9, %v218_v21, 0.0 }
 0x149   :  { %v221_v23 = vrot.slane %v220_v22, 4 }
 0x14b   :  { %v222_v24 = vadd.f32 %v221_v23, %v220_v22 }
 0x14d   :  { %v223_v25 = vrot.slane %v222_v24, 2 }
 0x14f   :  { %v224_v26 = vadd.f32 %v223_v25, %v222_v24 }
 0x151   :  { %v225_v27 = vrot.slane %v224_v26, 1 }
 0x153   :  { %v226_v29 = vadd.f32 %v225_v27, %v224_v26 }
 0x155   :  { %v227_v30 = vadd.f32 %v226_v29, %v219_v28 }
 0x157   :  { %229 = vst.msk [vmem:[#allocation6] sm:$0x1] %vm32_vm10, %v227_v30 }
 0x158   :  { %283 = shalt.err (!%p280_p9)
}
 0x159   :  { %239 = dma.vmem_to_hbm [thread:$0]  %s237_s1, 16, %s362_s2, [#allocation5]  }
 0x15a   :  { %294 = dma.done.wait [#allocation5], 16  }
 0x15b   :  { %295 = vsyncadd [#allocation5], 4294967280 }
 0x15c   :  { %243 = vsyncpa [#allocation4], 1 }
 0x15d   :  { %244 = vsyncpa [#allocation5], 1 }

</bundles_post_ra>
